<compile_context>
chip_gen: v7x
topology: tpu7x:2x2x1
jax: 0.10.0
libtpu: 0.0.40
codegen_flags: <defaults>
</compile_context>

<pallas_src>
import jax
import jax.numpy as jnp
from jax.experimental import pallas as pl
from jax.experimental.pallas import tpu as pltpu


def _round_up(n, m):
    return ((n + m - 1) // m) * m


def _estimation_kernel(x_ref, w1_ref, b1_ref, w2_ref, b2_ref, o_ref):
    # x: (6, TB), w1: (10, 6), b1: (10, 1), w2: (2, 10), b2: (2, 1), o: (2, TB)
    x = x_ref[...]

    # Linear(6 -> 10) + Tanh (batch on the lane axis; bias broadcasts across lanes).
    h = jnp.dot(w1_ref[...], x, preferred_element_type=jnp.float32) + b1_ref[...]
    h = jnp.tanh(h)

    # Dropout(p=0.5) -> identity in eval mode.

    # Linear(10 -> 2)
    logits = jnp.dot(w2_ref[...], h, preferred_element_type=jnp.float32) + b2_ref[...]

    # Softmax over the 2 classes, closed form: p0 = sigmoid(l0 - l1), p1 = 1 - p0.
    d = logits[0:1, :] - logits[1:2, :]
    p0 = 1.0 / (1.0 + jnp.exp(-d))
    probs = jnp.concatenate([p0, 1.0 - p0], axis=0)  # (2, TB), one lane-dense store
    o_ref[...] = probs.astype(o_ref.dtype)


def estimation_network_forward(x, w1, b1, w2, b2, *, batch_tile=65536):
    """x: (B, 6) float32; PyTorch-native params:
       w1: (10, 6), b1: (10, 1), w2: (2, 10), b2: (2, 1).
       Returns (B, 2) float32 softmax probabilities."""
    B, F = x.shape

    # Batch tile on the lane axis: multiple of 128, capped so tiny batches use one tile.
    tb = min(batch_tile, _round_up(B, 128))
    tb = _round_up(tb, 128)
    b_pad = _round_up(B, tb)

    # Transpose to batch-on-lanes layout and pad the batch (tail is sliced off after).
    xt = x.T  # (6, B)
    if b_pad != B:
        xt = jnp.pad(xt, ((0, 0), (0, b_pad - B)))

    grid = (b_pad // tb,)

    out_t = pl.pallas_call(
        _estimation_kernel,
        out_shape=jax.ShapeDtypeStruct((2, b_pad), jnp.float32),
        grid=grid,
        in_specs=[
            pl.BlockSpec((F, tb), lambda i: (0, i)),      # x tile: pipelined (double-buffered)
            pl.BlockSpec((10, F), lambda i: (0, 0)),      # W1: resident
            pl.BlockSpec((10, 1), lambda i: (0, 0)),      # b1: resident
            pl.BlockSpec((2, 10), lambda i: (0, 0)),      # W2: resident
            pl.BlockSpec((2, 1), lambda i: (0, 0)),       # b2: resident
        ],
        out_specs=pl.BlockSpec((2, tb), lambda i: (0, i)),
        compiler_params=pltpu.CompilerParams(
            dimension_semantics=("parallel",),            # shard batch over TCs (v7x)
        ),
    )(xt, w1, b1, w2, b2)

    return out_t[:, :B].T  # (B, 2)


def init_params(key):
    """PyTorch-style Linear init: U(-1/sqrt(fan_in), 1/sqrt(fan_in)); weights (out, in)."""
    k1, k2, k3, k4 = jax.random.split(key, 4)
    bound1 = 1.0 / jnp.sqrt(6.0)
    bound2 = 1.0 / jnp.sqrt(10.0)
    w1 = jax.random.uniform(k1, (10, 6), jnp.float32, -bound1, bound1)
    b1 = jax.random.uniform(k2, (10, 1), jnp.float32, -bound1, bound1)
    w2 = jax.random.uniform(k3, (2, 10), jnp.float32, -bound2, bound2)
    b2 = jax.random.uniform(k4, (2, 1), jnp.float32, -bound2, bound2)
    return w1, b1, w2, b2


def reference_forward(x, w1, b1, w2, b2):
    h = jnp.tanh(x @ w1.T + b1.T)
    logits = h @ w2.T + b2.T
    return jax.nn.softmax(logits, axis=1)


if __name__ == "__main__":
    key = jax.random.PRNGKey(0)
    kx, kp = jax.random.split(key)

    batch = 8
    x = jax.random.normal(kx, (batch, 6), jnp.float32)
    w1, b1, w2, b2 = init_params(kp)

    out = estimation_network_forward(x, w1, b1, w2, b2)
    out = jax.block_until_ready(out)

    ref = reference_forward(x, w1, b1, w2, b2)
    assert out.shape == (batch, 2)
    assert jnp.allclose(out, ref, atol=1e-5, rtol=1e-5)
    # Softmax rows sum to 1.
    assert jnp.allclose(jnp.sum(out, axis=1), jnp.ones((batch,)), atol=1e-5)

    print("KERNEL_OK")
</pallas_src>

<mosaic_0001>
module attributes {stable_mosaic.version = 11 : i64} {
  func.func @_estimation_kernel(%arg0: i32, %arg1: memref<6x128xf32, #tpu.memory_space<vmem>>, %arg2: memref<10x6xf32, #tpu.memory_space<vmem>>, %arg3: memref<10x1xf32, #tpu.memory_space<vmem>>, %arg4: memref<2x10xf32, #tpu.memory_space<vmem>>, %arg5: memref<2x1xf32, #tpu.memory_space<vmem>>, %arg6: memref<2x128xf32, #tpu.memory_space<vmem>>) attributes {dimension_semantics = [#tpu.dimension_semantics<parallel>], iteration_bounds = array<i64: 1>, scalar_prefetch = 0 : i64, scratch_operands = 0 : i64, tpu.core_type = #tpu.core_type<tc>, window_params = [{transform_indices = @transform_0, window_bounds = array<i64: 6, 128>}, {pipeline_mode = #tpu.pipeline_mode<synchronous>, transform_indices = @transform_1, window_bounds = array<i64: 10, 6>}, {pipeline_mode = #tpu.pipeline_mode<synchronous>, transform_indices = @transform_2, window_bounds = array<i64: 10, 1>}, {pipeline_mode = #tpu.pipeline_mode<synchronous>, transform_indices = @transform_3, window_bounds = array<i64: 2, 10>}, {pipeline_mode = #tpu.pipeline_mode<synchronous>, transform_indices = @transform_4, window_bounds = array<i64: 2, 1>}, {transform_indices = @transform_5, window_bounds = array<i64: 2, 128>}]} {
    %c0 = arith.constant 0 : index
    %c0_0 = arith.constant 0 : index
    %0 = vector.load %arg1[%c0, %c0_0] : memref<6x128xf32, #tpu.memory_space<vmem>>, vector<6x128xf32>
    %c0_1 = arith.constant 0 : index
    %c0_2 = arith.constant 0 : index
    %1 = vector.load %arg2[%c0_1, %c0_2] : memref<10x6xf32, #tpu.memory_space<vmem>>, vector<10x6xf32>
    %cst = arith.constant dense<0.000000e+00> : vector<10x128xf32>
    %2 = tpu.matmul %1, %0, %cst {dimension_numbers = #tpu.dot_dimension_numbers<[1], [0], [0], [1], [0, 0, 1, 1], [], []>} : vector<10x6xf32>, vector<6x128xf32>, vector<10x128xf32> -> vector<10x128xf32>
    %c0_3 = arith.constant 0 : index
    %c0_4 = arith.constant 0 : index
    %3 = vector.load %arg3[%c0_3, %c0_4] : memref<10x1xf32, #tpu.memory_space<vmem>>, vector<10x1xf32>
    %4 = vector.broadcast %3 : vector<10x1xf32> to vector<10x128xf32>
    %5 = arith.addf %2, %4 : vector<10x128xf32>
    %6 = math.tanh %5 : vector<10x128xf32>
    %c0_5 = arith.constant 0 : index
    %c0_6 = arith.constant 0 : index
    %7 = vector.load %arg4[%c0_5, %c0_6] : memref<2x10xf32, #tpu.memory_space<vmem>>, vector<2x10xf32>
    %cst_7 = arith.constant dense<0.000000e+00> : vector<2x128xf32>
    %8 = tpu.matmul %7, %6, %cst_7 {dimension_numbers = #tpu.dot_dimension_numbers<[1], [0], [0], [1], [0, 0, 1, 1], [], []>} : vector<2x10xf32>, vector<10x128xf32>, vector<2x128xf32> -> vector<2x128xf32>
    %c0_8 = arith.constant 0 : index
    %c0_9 = arith.constant 0 : index
    %9 = vector.load %arg5[%c0_8, %c0_9] : memref<2x1xf32, #tpu.memory_space<vmem>>, vector<2x1xf32>
    %10 = vector.broadcast %9 : vector<2x1xf32> to vector<2x128xf32>
    %11 = arith.addf %8, %10 : vector<2x128xf32>
    %12 = vector.extract_strided_slice %11 {offsets = [0, 0], sizes = [1, 128], strides = [1, 1]} : vector<2x128xf32> to vector<1x128xf32>
    %13 = vector.extract_strided_slice %11 {offsets = [1, 0], sizes = [1, 128], strides = [1, 1]} : vector<2x128xf32> to vector<1x128xf32>
    %14 = arith.subf %12, %13 : vector<1x128xf32>
    %cst_10 = arith.constant 0.000000e+00 : f32
    %15 = vector.broadcast %cst_10 : f32 to vector<1x128xf32>
    %16 = arith.subf %15, %14 : vector<1x128xf32>
    %17 = math.exp %16 : vector<1x128xf32>
    %cst_11 = arith.constant 1.000000e+00 : f32
    %18 = vector.broadcast %cst_11 : f32 to vector<1x128xf32>
    %19 = arith.addf %18, %17 : vector<1x128xf32>
    %cst_12 = arith.constant 1.000000e+00 : f32
    %20 = vector.broadcast %cst_12 : f32 to vector<1x128xf32>
    %21 = arith.divf %20, %19 : vector<1x128xf32>
    %cst_13 = arith.constant 1.000000e+00 : f32
    %22 = vector.broadcast %cst_13 : f32 to vector<1x128xf32>
    %23 = arith.subf %22, %21 : vector<1x128xf32>
    %24 = tpu.concatenate %21, %23 in 0 : vector<1x128xf32>, vector<1x128xf32> -> vector<2x128xf32>
    %c0_14 = arith.constant 0 : index
    %c0_15 = arith.constant 0 : index
    %25 = vector.load %arg6[%c0_14, %c0_15] : memref<2x128xf32, #tpu.memory_space<vmem>>, vector<2x128xf32>
    tpu.vector_store %arg6[%c0_14, %c0_15], %24 {strides = array<i32>} : memref<2x128xf32, #tpu.memory_space<vmem>>, vector<2x128xf32>,
    return
  }
  func.func @transform_0(%arg0: i32) -> (i32, i32) {
    %c0_i32 = arith.constant 0 : i32
    %c0_i32_0 = arith.constant 0 : i32
    return %c0_i32, %arg0 : i32, i32
  }
  func.func @transform_1(%arg0: i32) -> (i32, i32) {
    %c0_i32 = arith.constant 0 : i32
    %c0_i32_0 = arith.constant 0 : i32
    %c0_i32_1 = arith.constant 0 : i32
    return %c0_i32, %c0_i32_0 : i32, i32
  }
  func.func @transform_2(%arg0: i32) -> (i32, i32) {
    %c0_i32 = arith.constant 0 : i32
    %c0_i32_0 = arith.constant 0 : i32
    %c0_i32_1 = arith.constant 0 : i32
    return %c0_i32, %c0_i32_0 : i32, i32
  }
  func.func @transform_3(%arg0: i32) -> (i32, i32) {
    %c0_i32 = arith.constant 0 : i32
    %c0_i32_0 = arith.constant 0 : i32
    %c0_i32_1 = arith.constant 0 : i32
    return %c0_i32, %c0_i32_0 : i32, i32
  }
  func.func @transform_4(%arg0: i32) -> (i32, i32) {
    %c0_i32 = arith.constant 0 : i32
    %c0_i32_0 = arith.constant 0 : i32
    %c0_i32_1 = arith.constant 0 : i32
    return %c0_i32, %c0_i32_0 : i32, i32
  }
  func.func @transform_5(%arg0: i32) -> (i32, i32) {
    %c0_i32 = arith.constant 0 : i32
    %c0_i32_0 = arith.constant 0 : i32
    return %c0_i32, %arg0 : i32, i32
  }
}

</mosaic_0001>

<bundles_post_ra>
// kernel: tpu_custom_call.1
= control target key start
LH: loop header
LB: loop body
LE: loop exit
PB: predicated region body
PF: predicated region fallthrough
CT: control target
= control target key end

     0   :  { %vm43_vm0 = vcmask 1045504   ;;  %vm36_vm1 = vcmask 48128   ;;  %v307_v4 = vmov 0   ;;  %s376_s0 = inlined_call_operand.vmem [shape: f32[6,128], index: 0, kind: input, shape index: {}]   ;;  %s377_s1 = inlined_call_operand.vmem [shape: f32[10,6], index: 1, kind: input, shape index: {}]   ;;  %s378_s2 = inlined_call_operand.vmem [shape: f32[10,1], index: 2, kind: input, shape index: {}]   ;;  %s379_s3 = inlined_call_operand.vmem [shape: f32[2,10], index: 3, kind: input, shape index: {}]   ;;  %s380_s4 = inlined_call_operand.vmem [shape: f32[2,1], index: 4, kind: input, shape index: {}]   ;;  %s381_s5 = inlined_call_operand.hbm [shape: f32[2,128], index: 5, kind: output, shape index: {}]  }
   0x1   :  { %v21_v0 = vld [vmem:[%s376_s0] sm:$0x3f]  ;;  %v23_v2 = vld [vmem:[%s377_s1 + $0x8] sm:$0x3]  ;;  %273 = vset.pattern.permute.xlu0 %v307_v4 }
   0x2   :  { %v22_v1 = vld [vmem:[%s377_s1] sm:$0xff]  ;;  %251 = vmatprep.subr.msk.mxu0 %vm43_vm0, %v21_v0 }
   0x3   :  { %253 = vmatprep.mubr.msk.f32.mxu0 %vm36_vm1, %v22_v1  ;;  %v24_v3 = vld [vmem:[%s378_s2] sm:$0xff]  ;;  %252 = vmatpush3.msk.msra.mxu0 %vm43_vm0, %v21_v0 }
   0x4   :  { %10 = vsyncpa [#allocation3], 0  ;;  %254 = vmatmul.mubr.msk.f32.vlgmr.msra.gmra.mrb[0].mxu0 %vm36_vm1, %v23_v2  ;;  %28 = vperm.xlu0 %273, %v24_v3   ;;  %v25_v5 = vld [vmem:[%s378_s2 + $0x8] sm:$0x3]  ;;  %v308_v6 = vmov 0.0|0.0   ;;  %vm309_vm2 = vmmov 0  }
   0x5   :  { %274 = vset.pattern.permute.xlu1 %v307_v4  ;;  %263 = vmatprep.subr.bf16.mxu1 %v308_v6  ;;  %v310_v7 = vmov 0.0   ;;  %v125_v8 = vld [vmem:[%s380_s4] sm:$0x3]  ;;  %vm135_vm3 = vcmask 1041408   ;;  %vm311_vm4 = vmmov 1   ;;  %vm131_vm6 = vcmask 80896  }
   0x6   :  { %260 = vmatprep.mubr.msk.f32.mxu1 %vm309_vm2, %v310_v7  ;;  %128 = vperm.xlu1 %274, %v125_v8   ;;  %vm265_vm5 = vmpackc.low %vm135_vm3, %vm311_vm4  ;;  %v124_v18 = vld [vmem:[%s379_s3] sm:$0x3]  ;;  %s312_s4 = smov [#allocation2]   ;;  %vm223_vm7 = vcmask 1040384  }
   0x7   :  { %s232_s29 = sshll.u32 %s312_s4, 4  ;;  %s233_s29 = int_to_ptr.vmem [resolvable:$true] %s232_s29 }
   0x8   :  { %33 = vperm.xlu0 %273, %v25_v5   ;;  %s283_s3 = scalar_lea.vmem %s233_s29, 32  ;;  %p288_p1 = scmp.lt.s32.totalorder %s233_s29, %s233_s29 }
   0x9   :  { %p284_p0 = scmp.ne.s32.totalorder %s233_s29, %s283_s3  ;;  %p289_p2 = scmp.lt.s32.totalorder %s283_s3, %s283_s3 }
   0xb   :  { %p290_p3 = por %p289_p2, %p288_p1 }
   0xd   :  { %p291_p4 = pnand %p290_p3, %p284_p0 }
  0x83   :  { %v29_v9 = vpop.permute.xlu0 %28 }
  0x85   :  { %v129_v19 = vpop.permute.xlu1 %128 }
  0x87   :  { %v34_v10 = vpop.permute.xlu0 %33 }
  0xd7   :  { %v255_v11 = vpop.f32.mrb[0].mxu0 }
  0xd8   :  { %v119_v12 = vadd.f32 %v255_v11, %v34_v10  ;;  %v113_v13 = vpop.f32.mrb[1].mxu0 }
  0xd9   :  { %v114_v14 = vadd.f32 %v113_v13, %v29_v9 }
  0xda   :  { %275 = vtanh.f32 %v119_v12 }
  0xdb   :  { %277 = vtanh.f32 %v114_v14 }
  0xe4   :  { %v276_v15 = vpop.eup %275 }
  0xe5   :  { %v278_v16 = vpop.eup %277 }
  0xe6   :  { %v264_v17 = vpack.c.bf16 %v276_v15, %v278_v16 }
  0xe8   :  { %266 = vmatpush3.bf16.msk.msra.mxu1 %vm265_vm5, %v264_v17 }
  0xeb   :  { %261 = vmatmul.mubr.msk.f32.vlgmr.msra.gmra.mrb[0].mxu1 %vm131_vm6, %v124_v18 }
 0x1be   :  { %v205_v20 = vpop.f32.mrb[0].mxu1 }
 0x1bf   :  { %v206_v21 = vadd.f32 %v205_v20, %v129_v19  ;;  %v262_v22 = vpop.f32.mrb[1].mxu1 }
 0x1c1   :  { %v210_v23 = vrot.slane %v206_v21, 1 }
 0x1c3   :  { %v212_v24 = vsub.f32 %v206_v21, %v210_v23 }
 0x1c5   :  { %v213_v25 = vsub.f32 0.0, %v212_v24 }
 0x1c7   :  { %v214_v26 = vmul.f32 1.442695, %v213_v25 }
 0x1c9   :  { %279 = vpow2.f32 %v214_v26 }
 0x1d3   :  { %v280_v27 = vpop.eup %279 }
 0x1d4   :  { %v216_v28 = vadd.f32 1.0, %v280_v27 }
 0x1d6   :  { %281 = vrcp.f32 %v216_v28 }
 0x1e0   :  { %v282_v29 = vpop.eup %281 }
 0x1e1   :  { %v219_v30 = vsub.f32 1.0, %v282_v29 }
 0x1e3   :  { %v221_v31 = vrot.slane %v219_v30, 7 }
 0x1e5   :  { %v224_v32 = vsel %vm223_vm7, %v282_v29, %v221_v31 }
 0x1e6   :  { %225 = vst [vmem:[#allocation2] sm:$0x3] %v224_v32 }
 0x1e7   :  { %294 = shalt.err (!%p291_p4)
}
 0x1e8   :  { %s295_s7 = scalar_lea.hbm %s381_s5, 32 }
 0x1e9   :  { %p296_p5 = scmp.ne.s32.totalorder %s381_s5, %s295_s7  ;;  %p299_p6 = scmp.lt.u32.totalorder %s295_s7, %s381_s5 }
 0x1eb   :  { %p301_p7 = pnand %p299_p6, %p296_p5 }
 0x1ed   :  { %304 = shalt.err (!%p301_p7)
}
 0x1ee   :  { %235 = dma.vmem_to_hbm [thread:$0]  %s233_s29, 32, %s381_s5, [#allocation3]  }
 0x1ef   :  { %305 = dma.done.wait [#allocation3], 32  }
 0x1f0   :  { %306 = vsyncadd [#allocation3], 4294967264 }
 0x1f1   :  { %239 = vsyncpa [#allocation3], 1 }

</bundles_post_ra>
